<compile_context>
chip_gen: v5e
topology: v5e:2x2
jax: 0.10.0
libtpu: 0.0.40
codegen_flags: <defaults>
</compile_context>

<pallas_src>
import functools

import jax
import jax.numpy as jnp
from jax.experimental import pallas as pl
from jax.experimental.pallas import tpu as pltpu


def _round_up(v, m):
    return (v + m - 1) // m * m


def _round_down(v, m):
    return max(m, (v // m) * m)


def _sublayer_connection_kernel(x_ref, w_tr_ref, w_sub_ref, b_ref, o_ref, *,
                                eps, n_feat, mm_dtype):
    """One (row-tile, n-tile) of the fused layernorm + (trans (+) sublayer) matmul.

    x_ref    : (TM, F_pad)       input rows (feature cols zero-padded if needed)
    w_tr_ref : (F_pad, TN)       W_trans (bf16, zero-padded)
    w_sub_ref: (F_pad, TN)       diag(a_2) @ W_sub (bf16, zero-padded)
    b_ref    : (1, TN)           b_trans + b_sub + b_2 @ W_sub (f32)
    o_ref    : (TM, TN)
    """
    x = x_ref[...].astype(jnp.float32)

    # LayerNorm stats over the TRUE feature count (PyTorch: unbiased std with
    # ddof=1, eps added to std).  Two-pass sum-of-squared-deviations form to
    # avoid E[x^2]-E[x]^2 cancellation; padded feature columns are masked out.
    col = jax.lax.broadcasted_iota(jnp.int32, x.shape, dimension=1)
    valid = col < n_feat
    mean = jnp.sum(jnp.where(valid, x, 0.0), axis=-1, keepdims=True) * (1.0 / n_feat)
    diff = jnp.where(valid, x - mean, 0.0)
    # n_feat == 1 would be ddof=1 division by zero (PyTorch returns NaN there);
    # guard so the kernel stays finite.
    var = jnp.sum(diff * diff, axis=-1, keepdims=True) * (1.0 / max(n_feat - 1, 1))
    inv = pl.reciprocal(jnp.sqrt(var) + eps, approx=True)   # EUP slot, not VPU div
    normed = diff * inv          # a_2 / b_2 are folded into w_sub_ref / b_ref

    # Two accumulating MXU dots on register values (no VMEM staging round-trip),
    # bf16 operands, f32 accumulation.
    out = jnp.dot(x.astype(mm_dtype), w_tr_ref[...],
                  preferred_element_type=jnp.float32)
    out = out + jnp.dot(normed.astype(mm_dtype), w_sub_ref[...],
                        preferred_element_type=jnp.float32)
    o_ref[...] = (out + b_ref[...]).astype(o_ref.dtype)


def sublayer_connection(x, a2, b2, w_sub, b_sub, w_tr, b_tr, *, eps=1e-6):
    """x: [B, S, F_in] -> [B, S, F_out]. Inference-mode SublayerConnection with
    sublayer = Linear(F_in, F_out); DropPath / MaxPool(stride=1) are identity."""
    B, S, F_in = x.shape
    F_out = w_sub.shape[1]
    rows = B * S

    # ---- parameter folding (plain JAX, once, outside the kernel hot loop) ----
    a2 = a2.reshape(-1).astype(jnp.float32)
    b2 = b2.reshape(-1).astype(jnp.float32)
    w_sub32 = w_sub.astype(jnp.float32)
    w_tr32 = w_tr.astype(jnp.float32)
    w_sub_eff = a2[:, None] * w_sub32                           # diag(a2) @ W_sub
    b_total = (b_tr.reshape(-1).astype(jnp.float32)
               + b_sub.reshape(-1).astype(jnp.float32)
               + b2 @ w_sub32)                                  # (F_out,)

    # ---- lane-dense padding of the small resident params; bf16 MXU operands ----
    F_pad = _round_up(F_in, 128)
    F_out_pad = _round_up(F_out, 128)
    mm_dtype = jnp.bfloat16

    def _pad_w(w32):
        if w32.shape == (F_pad, F_out_pad):
            return w32.astype(mm_dtype)
        return (jnp.zeros((F_pad, F_out_pad), mm_dtype)
                .at[:F_in, :F_out].set(w32.astype(mm_dtype)))

    w_tr_p = _pad_w(w_tr32)
    w_sub_p = _pad_w(w_sub_eff)
    if F_out_pad == F_out:
        b_p = b_total.reshape(1, F_out)
    else:
        b_p = jnp.zeros((1, F_out_pad), jnp.float32).at[0, :F_out].set(b_total)

    # ---- x: reshape only; zero-pad feature cols only if F_in not 128-aligned.
    #      No row padding: partial row tiles are masked by Pallas at the edges.
    x2d = x.reshape(rows, F_in)
    if F_pad != F_in:
        x2d = jnp.zeros((rows, F_pad), x.dtype).at[:, :F_in].set(x2d)

    # ---- VMEM budget from the actual chip (v5e/v6e: 128 MiB, v7x: 64 MiB) ----
    try:
        vmem_cap = int(pltpu.get_tpu_info().vmem_capacity_bytes)
    except Exception:
        vmem_cap = 64 * 2**20
    budget = (vmem_cap * 3) // 4          # ~25% headroom for compiler scratch

    xb = jnp.dtype(x.dtype).itemsize
    ob = jnp.dtype(x.dtype).itemsize
    wb = jnp.dtype(mm_dtype).itemsize

    # N-tiling (mainly v7x): keep resident weights within ~1/3 of the budget.
    TN = F_out_pad
    if 2 * F_pad * F_out_pad * wb > budget // 3:
        TN = min(F_out_pad,
                 _round_down((budget // 3) // (2 * 2 * F_pad * wb), 128))
    n_tiles_n = pl.cdiv(F_out_pad, TN)
    single_buffer_w = (n_tiles_n == 1)    # weight/bias blocks are grid-invariant

    w_bufs = 1 if single_buffer_w else 2
    weight_bytes = w_bufs * (2 * F_pad * TN * wb + TN * 4)
    per_row = 2 * F_pad * xb + 2 * TN * ob        # double-buffered x / out tiles
    tm_cap = max(8, (budget - weight_bytes) // per_row)

    if rows >= 256:
        # Big multiple-of-128 row tiles (amortize per-step overhead), but keep
        # >= 4 grid steps so megacore / v7x dual-TC sharding has work.
        TM = min(1024, tm_cap, _round_up(pl.cdiv(rows, 4), 128))
        TM = _round_down(TM, 128)
    else:
        # Tiny inputs: >= 2 row tiles when possible (v7x has 2 TensorCores).
        TM = _round_up(pl.cdiv(rows, 2), 8) if rows >= 16 else _round_up(max(rows, 1), 8)
        TM = min(TM, _round_down(tm_cap, 8))
    n_tiles_m = pl.cdiv(rows, TM)

    kernel = functools.partial(_sublayer_connection_kernel,
                               eps=eps, n_feat=F_in, mm_dtype=mm_dtype)

    def _build(single_buffer):
        def _wspec():
            kw = {"pipeline_mode": pl.Buffered(1)} if single_buffer else {}
            return pl.BlockSpec((F_pad, TN), lambda i, j: (0, j), **kw)

        def _bspec():
            kw = {"pipeline_mode": pl.Buffered(1)} if single_buffer else {}
            return pl.BlockSpec((1, TN), lambda i, j: (0, j), **kw)

        return pl.pallas_call(
            kernel,
            out_shape=jax.ShapeDtypeStruct((rows, F_out_pad), x.dtype),
            grid_spec=pltpu.PrefetchScalarGridSpec(
                num_scalar_prefetch=0,
                grid=(n_tiles_m, n_tiles_n),
                in_specs=[
                    pl.BlockSpec((TM, F_pad), lambda i, j: (i, 0)),   # x rows
                    _wspec(),                                         # W_trans
                    _wspec(),                                         # diag(a2) W_sub
                    _bspec(),                                         # folded bias
                ],
                out_specs=pl.BlockSpec((TM, TN), lambda i, j: (i, j)),
            ),
            compiler_params=pltpu.CompilerParams(
                dimension_semantics=("parallel", "parallel"),
                vmem_limit_bytes=int(budget)),
        )

    try:
        out2d = _build(single_buffer_w)(x2d, w_tr_p, w_sub_p, b_p)
    except Exception:
        # Fallback: default double-buffering if Buffered(1) is rejected.
        out2d = _build(False)(x2d, w_tr_p, w_sub_p, b_p)

    if F_out_pad != F_out:
        out2d = out2d[:, :F_out]
    return out2d.reshape(B, S, F_out)


def reference(x, a2, b2, w_sub, b_sub, w_tr, b_tr, eps=1e-6):
    """Pure-JAX reference mirroring the PyTorch forward (unfolded params, f32)."""
    x = x.astype(jnp.float32)
    mean = jnp.mean(x, axis=-1, keepdims=True)
    diff = x - mean
    var = jnp.sum(diff * diff, axis=-1, keepdims=True) / (x.shape[-1] - 1)
    std = jnp.sqrt(var)
    normed = a2.reshape(-1) * diff / (std + eps) + b2.reshape(-1)
    res = x @ w_tr + b_tr.reshape(-1)
    sub = normed @ w_sub + b_sub.reshape(-1)
    return res + sub


if __name__ == "__main__":
    B, S, F_in, F_out = 2, 8, 32, 64   # size_in != size_out -> trans Linear on
    key = jax.random.PRNGKey(0)
    kx, ka, kb, kws, kbs, kwt, kbt = jax.random.split(key, 7)

    x = jax.random.normal(kx, (B, S, F_in), dtype=jnp.float32)

    # LayerNorm affine params (random, to exercise the folding path)
    a2 = 1.0 + 0.1 * jax.random.normal(ka, (F_in,), dtype=jnp.float32)
    b2 = 0.1 * jax.random.normal(kb, (F_in,), dtype=jnp.float32)

    # Deterministic synthetic weights for the sublayer and trans Linears
    w_sub = 0.05 * jax.random.normal(kws, (F_in, F_out), dtype=jnp.float32)
    b_sub = 0.01 * jax.random.normal(kbs, (F_out,), dtype=jnp.float32)
    w_tr = 0.05 * jax.random.normal(kwt, (F_in, F_out), dtype=jnp.float32)
    b_tr = 0.01 * jax.random.normal(kbt, (F_out,), dtype=jnp.float32)

    out = sublayer_connection(x, a2, b2, w_sub, b_sub, w_tr, b_tr)
    out = jax.block_until_ready(out)

    ref = reference(x, a2, b2, w_sub, b_sub, w_tr, b_tr)
    assert out.shape == (B, S, F_out)
    err = jnp.max(jnp.abs(out - ref))
    # bf16 MXU operands + approx reciprocal -> validate at a bf16-appropriate
    # tolerance (f32-accumulated; typical |err| here is ~1e-3).
    assert jnp.allclose(out, ref, atol=2e-2, rtol=2e-2), f"max err {err}"

    print("KERNEL_OK")
</pallas_src>

<mosaic_0001>
module attributes {stable_mosaic.version = 11 : i64} {
  func.func @_sublayer_connection_kernel(%arg0: i32, %arg1: i32, %arg2: memref<8x128xf32, #tpu.memory_space<vmem>>, %arg3: memref<128x128xbf16, #tpu.memory_space<vmem>>, %arg4: memref<128x128xbf16, #tpu.memory_space<vmem>>, %arg5: memref<1x128xf32, #tpu.memory_space<vmem>>, %arg6: memref<8x128xf32, #tpu.memory_space<vmem>>) attributes {dimension_semantics = [#tpu.dimension_semantics<parallel>, #tpu.dimension_semantics<parallel>], iteration_bounds = array<i64: 2, 1>, scalar_prefetch = 0 : i64, scratch_operands = 0 : i64, tpu.core_type = #tpu.core_type<tc>, window_params = [{transform_indices = @transform_0, window_bounds = array<i64: 8, 128>}, {pipeline_mode = #tpu.pipeline_mode<synchronous>, transform_indices = @transform_1, window_bounds = array<i64: 128, 128>}, {pipeline_mode = #tpu.pipeline_mode<synchronous>, transform_indices = @transform_2, window_bounds = array<i64: 128, 128>}, {pipeline_mode = #tpu.pipeline_mode<synchronous>, transform_indices = @transform_3, window_bounds = array<i64: 1, 128>}, {transform_indices = @transform_4, window_bounds = array<i64: 8, 128>}]} {
    %c0 = arith.constant 0 : index
    %c0_0 = arith.constant 0 : index
    %0 = vector.load %arg2[%c0, %c0_0] : memref<8x128xf32, #tpu.memory_space<vmem>>, vector<8x128xf32>
    %1 = tpu.iota {dimensions = array<i32: 1>} : vector<8x128xi32>
    %c32_i32 = arith.constant 32 : i32
    %2 = vector.broadcast %c32_i32 : i32 to vector<8x128xi32>
    %3 = arith.cmpi slt, %1, %2 : vector<8x128xi32>
    %cst = arith.constant 0.000000e+00 : f32
    %4 = vector.broadcast %cst : f32 to vector<8x128xf32>
    %5 = arith.select %3, %0, %4 : vector<8x128xi1>, vector<8x128xf32>
    %cst_1 = arith.constant dense<0.000000e+00> : vector<8xf32>
    %6 = vector.multi_reduction <add>, %5, %cst_1 [1] : vector<8x128xf32> to vector<8xf32>
    %7 = vector.shape_cast %6 : vector<8xf32> to vector<8x1xf32>
    %cst_2 = arith.constant 3.125000e-02 : f32
    %8 = vector.broadcast %cst_2 : f32 to vector<8x1xf32>
    %9 = arith.mulf %7, %8 : vector<8x1xf32>
    %10 = vector.broadcast %9 : vector<8x1xf32> to vector<8x128xf32>
    %11 = arith.subf %0, %10 : vector<8x128xf32>
    %cst_3 = arith.constant 0.000000e+00 : f32
    %12 = vector.broadcast %cst_3 : f32 to vector<8x128xf32>
    %13 = arith.select %3, %11, %12 : vector<8x128xi1>, vector<8x128xf32>
    %14 = arith.mulf %13, %13 : vector<8x128xf32>
    %cst_4 = arith.constant dense<0.000000e+00> : vector<8xf32>
    %15 = vector.multi_reduction <add>, %14, %cst_4 [1] : vector<8x128xf32> to vector<8xf32>
    %16 = vector.shape_cast %15 : vector<8xf32> to vector<8x1xf32>
    %cst_5 = arith.constant 0.0322580636 : f32
    %17 = vector.broadcast %cst_5 : f32 to vector<8x1xf32>
    %18 = arith.mulf %16, %17 : vector<8x1xf32>
    %19 = math.sqrt %18 : vector<8x1xf32>
    %cst_6 = arith.constant 9.99999997E-7 : f32
    %20 = vector.broadcast %cst_6 : f32 to vector<8x1xf32>
    %21 = arith.addf %19, %20 : vector<8x1xf32>
    %22 = tpu.reciprocal %21 {approx = true} : vector<8x1xf32> -> vector<8x1xf32>
    %23 = vector.broadcast %22 : vector<8x1xf32> to vector<8x128xf32>
    %24 = arith.mulf %13, %23 : vector<8x128xf32>
    %25 = arith.truncf %0 : vector<8x128xf32> to vector<8x128xbf16>
    %c0_7 = arith.constant 0 : index
    %c0_8 = arith.constant 0 : index
    %26 = vector.load %arg3[%c0_7, %c0_8] : memref<128x128xbf16, #tpu.memory_space<vmem>>, vector<128x128xbf16>
    %cst_9 = arith.constant dense<0.000000e+00> : vector<8x128xf32>
    %27 = tpu.matmul %25, %26, %cst_9 {dimension_numbers = #tpu.dot_dimension_numbers<[1], [0], [0], [1], [0, 0, 1, 1], [], []>} : vector<8x128xbf16>, vector<128x128xbf16>, vector<8x128xf32> -> vector<8x128xf32>
    %28 = arith.truncf %24 : vector<8x128xf32> to vector<8x128xbf16>
    %c0_10 = arith.constant 0 : index
    %c0_11 = arith.constant 0 : index
    %29 = vector.load %arg4[%c0_10, %c0_11] : memref<128x128xbf16, #tpu.memory_space<vmem>>, vector<128x128xbf16>
    %cst_12 = arith.constant dense<0.000000e+00> : vector<8x128xf32>
    %30 = tpu.matmul %28, %29, %cst_12 {dimension_numbers = #tpu.dot_dimension_numbers<[1], [0], [0], [1], [0, 0, 1, 1], [], []>} : vector<8x128xbf16>, vector<128x128xbf16>, vector<8x128xf32> -> vector<8x128xf32>
    %31 = arith.addf %27, %30 : vector<8x128xf32>
    %c0_13 = arith.constant 0 : index
    %c0_14 = arith.constant 0 : index
    %32 = vector.load %arg5[%c0_13, %c0_14] : memref<1x128xf32, #tpu.memory_space<vmem>>, vector<1x128xf32>
    %33 = vector.broadcast %32 : vector<1x128xf32> to vector<8x128xf32>
    %34 = arith.addf %31, %33 : vector<8x128xf32>
    %c0_15 = arith.constant 0 : index
    %c0_16 = arith.constant 0 : index
    %35 = vector.load %arg6[%c0_15, %c0_16] : memref<8x128xf32, #tpu.memory_space<vmem>>, vector<8x128xf32>
    tpu.vector_store %arg6[%c0_15, %c0_16], %34 {strides = array<i32>} : memref<8x128xf32, #tpu.memory_space<vmem>>, vector<8x128xf32>,
    return
  }
  func.func @transform_0(%arg0: i32, %arg1: i32) -> (i32, i32) {
    %c0_i32 = arith.constant 0 : i32
    %c0_i32_0 = arith.constant 0 : i32
    return %arg0, %c0_i32 : i32, i32
  }
  func.func @transform_1(%arg0: i32, %arg1: i32) -> (i32, i32) {
    %c0_i32 = arith.constant 0 : i32
    %c0_i32_0 = arith.constant 0 : i32
    return %c0_i32, %arg1 : i32, i32
  }
  func.func @transform_2(%arg0: i32, %arg1: i32) -> (i32, i32) {
    %c0_i32 = arith.constant 0 : i32
    %c0_i32_0 = arith.constant 0 : i32
    return %c0_i32, %arg1 : i32, i32
  }
  func.func @transform_3(%arg0: i32, %arg1: i32) -> (i32, i32) {
    %c0_i32 = arith.constant 0 : i32
    %c0_i32_0 = arith.constant 0 : i32
    return %c0_i32, %arg1 : i32, i32
  }
  func.func @transform_4(%arg0: i32, %arg1: i32) -> (i32, i32) {
    %c0_i32 = arith.constant 0 : i32
    return %arg0, %arg1 : i32, i32
  }
}

module attributes {stable_mosaic.version = 11 : i64} {
  func.func @_sublayer_connection_kernel(%arg0: i32, %arg1: i32, %arg2: memref<8x128xf32, #tpu.memory_space<vmem>>, %arg3: memref<128x128xbf16, #tpu.memory_space<vmem>>, %arg4: memref<128x128xbf16, #tpu.memory_space<vmem>>, %arg5: memref<1x128xf32, #tpu.memory_space<vmem>>, %arg6: memref<8x128xf32, #tpu.memory_space<vmem>>) attributes {dimension_semantics = [#tpu.dimension_semantics<parallel>, #tpu.dimension_semantics<parallel>], iteration_bounds = array<i64: 2, 1>, scalar_prefetch = 0 : i64, scratch_operands = 0 : i64, tpu.core_type = #tpu.core_type<tc>, window_params = [{transform_indices = @transform_0, window_bounds = array<i64: 8, 128>}, {transform_indices = @transform_1, window_bounds = array<i64: 128, 128>}, {transform_indices = @transform_2, window_bounds = array<i64: 128, 128>}, {transform_indices = @transform_3, window_bounds = array<i64: 1, 128>}, {transform_indices = @transform_4, window_bounds = array<i64: 8, 128>}]} {
    %c0 = arith.constant 0 : index
    %c0_0 = arith.constant 0 : index
    %0 = vector.load %arg2[%c0, %c0_0] : memref<8x128xf32, #tpu.memory_space<vmem>>, vector<8x128xf32>
    %1 = tpu.iota {dimensions = array<i32: 1>} : vector<8x128xi32>
    %c32_i32 = arith.constant 32 : i32
    %2 = vector.broadcast %c32_i32 : i32 to vector<8x128xi32>
    %3 = arith.cmpi slt, %1, %2 : vector<8x128xi32>
    %cst = arith.constant 0.000000e+00 : f32
    %4 = vector.broadcast %cst : f32 to vector<8x128xf32>
    %5 = arith.select %3, %0, %4 : vector<8x128xi1>, vector<8x128xf32>
    %cst_1 = arith.constant dense<0.000000e+00> : vector<8xf32>
    %6 = vector.multi_reduction <add>, %5, %cst_1 [1] : vector<8x128xf32> to vector<8xf32>
    %7 = vector.shape_cast %6 : vector<8xf32> to vector<8x1xf32>
    %cst_2 = arith.constant 3.125000e-02 : f32
    %8 = vector.broadcast %cst_2 : f32 to vector<8x1xf32>
    %9 = arith.mulf %7, %8 : vector<8x1xf32>
    %10 = vector.broadcast %9 : vector<8x1xf32> to vector<8x128xf32>
    %11 = arith.subf %0, %10 : vector<8x128xf32>
    %cst_3 = arith.constant 0.000000e+00 : f32
    %12 = vector.broadcast %cst_3 : f32 to vector<8x128xf32>
    %13 = arith.select %3, %11, %12 : vector<8x128xi1>, vector<8x128xf32>
    %14 = arith.mulf %13, %13 : vector<8x128xf32>
    %cst_4 = arith.constant dense<0.000000e+00> : vector<8xf32>
    %15 = vector.multi_reduction <add>, %14, %cst_4 [1] : vector<8x128xf32> to vector<8xf32>
    %16 = vector.shape_cast %15 : vector<8xf32> to vector<8x1xf32>
    %cst_5 = arith.constant 0.0322580636 : f32
    %17 = vector.broadcast %cst_5 : f32 to vector<8x1xf32>
    %18 = arith.mulf %16, %17 : vector<8x1xf32>
    %19 = math.sqrt %18 : vector<8x1xf32>
    %cst_6 = arith.constant 9.99999997E-7 : f32
    %20 = vector.broadcast %cst_6 : f32 to vector<8x1xf32>
    %21 = arith.addf %19, %20 : vector<8x1xf32>
    %22 = tpu.reciprocal %21 {approx = true} : vector<8x1xf32> -> vector<8x1xf32>
    %23 = vector.broadcast %22 : vector<8x1xf32> to vector<8x128xf32>
    %24 = arith.mulf %13, %23 : vector<8x128xf32>
    %25 = arith.truncf %0 : vector<8x128xf32> to vector<8x128xbf16>
    %c0_7 = arith.constant 0 : index
    %c0_8 = arith.constant 0 : index
    %26 = vector.load %arg3[%c0_7, %c0_8] : memref<128x128xbf16, #tpu.memory_space<vmem>>, vector<128x128xbf16>
    %cst_9 = arith.constant dense<0.000000e+00> : vector<8x128xf32>
    %27 = tpu.matmul %25, %26, %cst_9 {dimension_numbers = #tpu.dot_dimension_numbers<[1], [0], [0], [1], [0, 0, 1, 1], [], []>} : vector<8x128xbf16>, vector<128x128xbf16>, vector<8x128xf32> -> vector<8x128xf32>
    %28 = arith.truncf %24 : vector<8x128xf32> to vector<8x128xbf16>
    %c0_10 = arith.constant 0 : index
    %c0_11 = arith.constant 0 : index
    %29 = vector.load %arg4[%c0_10, %c0_11] : memref<128x128xbf16, #tpu.memory_space<vmem>>, vector<128x128xbf16>
    %cst_12 = arith.constant dense<0.000000e+00> : vector<8x128xf32>
    %30 = tpu.matmul %28, %29, %cst_12 {dimension_numbers = #tpu.dot_dimension_numbers<[1], [0], [0], [1], [0, 0, 1, 1], [], []>} : vector<8x128xbf16>, vector<128x128xbf16>, vector<8x128xf32> -> vector<8x128xf32>
    %31 = arith.addf %27, %30 : vector<8x128xf32>
    %c0_13 = arith.constant 0 : index
    %c0_14 = arith.constant 0 : index
    %32 = vector.load %arg5[%c0_13, %c0_14] : memref<1x128xf32, #tpu.memory_space<vmem>>, vector<1x128xf32>
    %33 = vector.broadcast %32 : vector<1x128xf32> to vector<8x128xf32>
    %34 = arith.addf %31, %33 : vector<8x128xf32>
    %c0_15 = arith.constant 0 : index
    %c0_16 = arith.constant 0 : index
    %35 = vector.load %arg6[%c0_15, %c0_16] : memref<8x128xf32, #tpu.memory_space<vmem>>, vector<8x128xf32>
    tpu.vector_store %arg6[%c0_15, %c0_16], %34 {strides = array<i32>} : memref<8x128xf32, #tpu.memory_space<vmem>>, vector<8x128xf32>,
    return
  }
  func.func @transform_0(%arg0: i32, %arg1: i32) -> (i32, i32) {
    %c0_i32 = arith.constant 0 : i32
    %c0_i32_0 = arith.constant 0 : i32
    return %arg0, %c0_i32 : i32, i32
  }
  func.func @transform_1(%arg0: i32, %arg1: i32) -> (i32, i32) {
    %c0_i32 = arith.constant 0 : i32
    %c0_i32_0 = arith.constant 0 : i32
    return %c0_i32, %arg1 : i32, i32
  }
  func.func @transform_2(%arg0: i32, %arg1: i32) -> (i32, i32) {
    %c0_i32 = arith.constant 0 : i32
    %c0_i32_0 = arith.constant 0 : i32
    return %c0_i32, %arg1 : i32, i32
  }
  func.func @transform_3(%arg0: i32, %arg1: i32) -> (i32, i32) {
    %c0_i32 = arith.constant 0 : i32
    %c0_i32_0 = arith.constant 0 : i32
    return %c0_i32, %arg1 : i32, i32
  }
  func.func @transform_4(%arg0: i32, %arg1: i32) -> (i32, i32) {
    %c0_i32 = arith.constant 0 : i32
    return %arg0, %arg1 : i32, i32
  }
}

</mosaic_0001>

<bundles_post_ra>
// kernel: tpu_custom_call.1
= control target key start
LH: loop header
LB: loop body
LE: loop exit
PB: predicated region body
PF: predicated region fallthrough
CT: control target
= control target key end

     0   :  { %9 = vsyncpa [#allocation3], 0  ;;  %s1158_s0 = inlined_call_operand.hbm [shape: f32[16,128], index: 0, kind: input, shape index: {}]   ;;  %s1159_s1 = inlined_call_operand.hbm [shape: bf16[128,128], index: 1, kind: input, shape index: {}]   ;;  %s1160_s2 = inlined_call_operand.hbm [shape: bf16[128,128], index: 2, kind: input, shape index: {}]   ;;  %s1161_s3 = inlined_call_operand.vmem [shape: f32[1,128], index: 3, kind: input, shape index: {}]   ;;  %s1162_s4 = inlined_call_operand.hbm [shape: f32[16,128], index: 4, kind: output, shape index: {}]  }
   0x1   :  { %11 = vsyncpa [#allocation3 + $0x1], 0 }
   0x2   :  { %12 = vsyncpa [#allocation6], 0 }
   0x3   :  { %13 = vsyncpa [#allocation4], 0 }
   0x4   :  { %15 = vsyncpa [#allocation4 + $0x1], 0  ;;  %s1007_s15 = smov 0   ;;  %s1009_s16 = smov 0  }
   0x5   :  { %s1011_s17 = smov 0   ;;  %s1013_s18 = smov 0  }
   0x6   :  { %s1015_s19 = smov 0   ;;  %s1017_s20 = smov 0  }
   0x7 LB: > { %s612_s21 = sadd.s32 4294967295, %s976_s20   ;;  %p614_p0 = scmp.ge.s32.totalorder %s976_s20, 1  ;;  %s976_s20 = sphi %s1017_s20, %s21_s20   ;;  %s972_s19 = sphi %s1015_s19, %s1172_s19   ;;  %s968_s18 = sphi %s1013_s18, %s1171_s18   ;;  %s964_s17 = sphi %s1011_s17, %s1170_s17   ;;  %s960_s16 = sphi %s1009_s16, %s1169_s16   ;;  %s956_s15 = sphi %s1007_s15, %s1168_s15  }
   0x8   : > { %p1041_p1 = scmp.eq.s32.totalorder %s612_s21, 0  ;;  %p170_p2 = scmp.lt.s32.totalorder %s976_s20, 3 }
   0x9   : > { %s183_s25 = sshll.u32 %s1159_s1, 4  ;;  %s978_s27 = smov [#allocation5]   ;;  %s184_s25 = int_to_ptr.hbm [resolvable:$true] %s183_s25 }
   0xa   : > { %p1049_p3 = pnand %p614_p0, %p170_p2  ;;  %s185_s28 = sshll.u32 %s978_s27, 4  ;;  %s186_s28 = int_to_ptr.vmem [resolvable:$true] %s185_s28 }
   0xb   : > { %p618_p6 = scmp.ge.s32.totalorder %s976_s20, 2  ;;  %s199_s5 = sshll.u32 %s1160_s2, 4  ;;  %s200_s5 = int_to_ptr.hbm [resolvable:$true] %s199_s5 }
   0xc   : > { %p722_p4 = pneg %p1049_p3  ;;  %s979_s6 = smov 64  }
   0xd   : > { %s980_s7 = smov 4   ;;  %s981_s8 = smov [#allocation7]  }
   0xe   : > { %p723_p5 = pnand %p722_p4, %p1041_p1  ;;  %s201_s9 = sshll.u32 %s981_s8, 4  ;;  %s202_s9 = int_to_ptr.vmem [resolvable:$true] %s201_s9 }
   0xf   : > { %s33_s10 = sadd.s32 1, %s972_s19  ;;  %s613_s11 = sadd.s32 4294967294, %s976_s20  }
  0x10   : > { %725 = dma.hbm_to_vmem [thread:$0]  (!%p723_p5), %s184_s25, 1024, %s186_s28, [#allocation6], %s979_s6, %s979_s6, %s980_s7  }
  0x11   : > { %728 = dma.hbm_to_vmem [thread:$0]  (!%p723_p5), %s200_s5, 1024, %s202_s9, [#allocation6], %s979_s6, %s979_s6, %s980_s7  }
  0x12   : > { %p35_p7 = scmp.ge.s32.totalorder %s33_s10, 2  ;;  %s40_s12 = sadd.s32 1, %s964_s17 }
  0x13   : > { %p47_p8 = scmp.ne.s32.totalorder %s964_s17, %s960_s16  ;;  %p48_p9 = scmp.eq.s32.totalorder %s976_s20, 0 }
  0x14   : > { %s1174_s10 = smov (%p35_p7, %s33_s10), 0  ;;  %p53_p10 = scmp.ne.s32.totalorder %s960_s16, %s956_s15 }
  0x15   : > { %s37_s13 = ssub.s32 %s972_s19, %s1174_s10  ;;  %p157_p11 = scmp.eq.s32.totalorder %s612_s21, 1 }
  0x16   : > { %p38_p12 = scmp.eq.s32.totalorder %s37_s13, 0  ;;  %p1077_p13 = por %p1041_p1, %p53_p10 }
  0x17   : > { %p1081_p0 = por %p157_p11, %p47_p8  ;;  %p163_p2 = scmp.eq.s32.totalorder %s613_s11, 1 }
  0x18   : > { %s1086_s24 = scalar_select %p38_p12, %s964_s17, %s40_s12  }
  0x19   : > { %p49_p4 = por %p48_p9, %p47_p8  ;;  %p1088_p5 = por %p163_p2, %p53_p10 }
  0x1a   : > { %s221_s27 = sand.u32 1, %s964_s17   ;;  %s620_s21 = sshll.u32 %s972_s19, 3 }
  0x1b   : > { %p739_p7 = scmp.lt.s32.totalorder %s976_s20, 2  ;;  %s619_s28 = sshll.u32 %s221_s27, 3 }
  0x1c   : > { %s229_s5 = scalar_lea.hbm %s1158_s0, %s620_s21  ;;  %s225_s7 = scalar_lea.vmem [#allocation2], %s619_s28 }
  0x1d   : > { %s231_s6 = sshll.u32 %s229_s5, 4  ;;  %s233_s8 = sshll.u32 %s225_s7, 4  ;;  %s232_s6 = int_to_ptr.hbm [resolvable:$true] %s231_s6  ;;  %s234_s8 = int_to_ptr.vmem [resolvable:$true] %s233_s8 }
  0x1e   : > { %p730_p11 = pnand %p739_p7, %p49_p4  ;;  %s222_s9 = scalar_lea.sflag [#allocation3], %s221_s27 }
  0x1f   : > { %242 = sbr.rel (%p1049_p3) target bundleno = 454 (0x1c6), region = 36  ;;  %s1101_s11 = sand.u32 (!%p1049_p3), 1, %s960_s16  }
  0x20   : > { %732 = dma.hbm_to_vmem [thread:$0]  (!%p730_p11), %s232_s6, 128, %s234_s8, %s222_s9  }
  0x21   : > { %s622_s12 = sshll.u32 (!%p1049_p3), %s1101_s11, 3  ;;  %s245_s13 = scalar_lea.sflag (!%p1049_p3), [#allocation3], %s1101_s11 }
  0x22   : > { %s248_s21 = scalar_lea.vmem (!%p1049_p3), [#allocation2], %s622_s12 }
  0x24   : > { %943 = dma.done.wait (%p1077_p13), %s245_s13, 128  }
  0x25   : > { %945 = vsyncadd (%p1077_p13), %s245_s13, 4294967168 }
  0x26   : > { %947 = dma.done.wait (%p1041_p1), [#allocation6], 2048  }
  0x27   : > { %949 = vsyncadd (%p1041_p1), [#allocation6], 4294965248  ;;  %v291_v0 = vlaneseq  ;;  %v290_v2 = vld [vmem:[%s248_s21] sm:$0xff]  ;;  %v699_v12 = vld [vmem:[#allocation5 + $0x28] sm:$0xff]  ;;  %s691_s22 = sshll.u32 %s968_s18, 3  ;;  %s286_s30 = scalar_lea.vmem [#allocation8], %s622_s12 }
  0x28   : > { %v701_v4 = vld [vmem:[#allocation5 + $0x38] sm:$0xff]  ;;  %v700_v10 = vld [vmem:[#allocation5 + $0x30] sm:$0xff]  ;;  %v698_v14 = vld [vmem:[#allocation5 + $0x20] sm:$0xff]  ;;  %v319_v23 = vpack.c.bf16 %v290_v2, %v290_v2  ;;  %s493_s27 = scalar_lea.hbm %s1162_s4, %s691_s22  ;;  %s495_s5 = sshll.u32 %s286_s30, 4  ;;  %s496_s5 = int_to_ptr.vmem [resolvable:$true] %s495_s5 }
  0x29   : > { %v292_v1 = vand.u32 127, %v291_v0  ;;  %462 = vmatpush.bf16.msra.mxu1 %v701_v4  ;;  %v709_v11 = vld [vmem:[#allocation7 + $0x38] sm:$0xff]  ;;  %v708_v13 = vld [vmem:[#allocation7 + $0x30] sm:$0xff]  ;;  %v707_v15 = vld [vmem:[#allocation7 + $0x28] sm:$0xff]  ;;  %s497_s6 = sshll.u32 %s493_s27, 4  ;;  %s482_s18 = scalar_lea.sflag [#allocation4], %s1101_s11  ;;  %s498_s6 = int_to_ptr.hbm [resolvable:$true] %s497_s6 }
  0x2a   : > { %401 = vmatpush.bf16.msra.mxu0 %v709_v11  ;;  %v697_v16 = vld [vmem:[#allocation5 + $0x18] sm:$0xff]  ;;  %v706_v17 = vld [vmem:[#allocation7 + $0x20] sm:$0xff]  ;;  %v696_v18 = vld [vmem:[#allocation5 + $0x10] sm:$0xff]  ;;  %s904_s7 = sshra.s32 %s498_s6, 4  ;;  %s910_s21 = scalar_lea.hbm %s1162_s4, 16  ;;  %s905_s7 = int_to_ptr.hbm [resolvable:$true] %s904_s7 }
  0x2b   : > { %vm293_vm0 = vcmp.lt.s32.totalorder %v292_v1, 32  ;;  %v705_v19 = vld [vmem:[#allocation7 + $0x18] sm:$0xff]  ;;  %v695_v20 = vld [vmem:[#allocation5 + $0x8] sm:$0xff]  ;;  %v704_v21 = vld [vmem:[#allocation7 + $0x10] sm:$0xff]  ;;  %s906_s8 = scalar_lea.hbm %s905_s7, 8  ;;  %p911_p9 = scmp.lt.s32.totalorder %s905_s7, %s1162_s4 }
  0x2c   : > { %v294_v3 = vsel %vm293_vm0, %v290_v2, 0.0  ;;  %v694_v22 = vld [vmem:[#allocation5] sm:$0xff]  ;;  %v703_v24 = vld [vmem:[#allocation7 + $0x8] sm:$0xff]  ;;  %v795_v44 = vld [vmem:[%s1161_s3] ss:$0 sm:$0xff]  ;;  %p907_p1 = scmp.ne.s32.totalorder %s905_s7, %s906_s8  ;;  %p912_p10 = scmp.lt.s32.totalorder %s910_s21, %s906_s8 }
  0x2d   : > { %295 = vadd.xlane.f32.xlu0 %v294_v3  ;;  %463 = vmatpush.bf16.msra.mxu1 %v700_v10  ;;  %v702_v25 = vld [vmem:[#allocation7] sm:$0xff] }
  0x2e   : > { %402 = vmatpush.bf16.msra.mxu0 %v708_v13  ;;  %p908_p3 = pnand %p907_p1, %p1081_p0  ;;  %p913_p12 = por %p912_p10, %p911_p9 }
  0x30   : > { %p909_p8 = pneg %p908_p3 }
  0x31   : > { %464 = vmatpush.bf16.msra.mxu1 %v699_v12 }
  0x32   : > { %403 = vmatpush.bf16.msra.mxu0 %v707_v15  ;;  %p914_p13 = pnand %p913_p12, %p909_p8 }
  0x35   : > { %465 = vmatpush.bf16.msra.mxu1 %v698_v14 }
  0x36   : > { %404 = vmatpush.bf16.msra.mxu0 %v706_v17 }
  0x39   : > { %466 = vmatpush.bf16.msra.mxu1 %v697_v16 }
  0x3a   : > { %405 = vmatpush.bf16.msra.mxu0 %v705_v19 }
  0x3d   : > { %467 = vmatpush.bf16.msra.mxu1 %v696_v18 }
  0x3e   : > { %406 = vmatpush.bf16.msra.mxu0 %v704_v21 }
  0x41   : > { %468 = vmatpush.bf16.msra.mxu1 %v695_v20 }
  0x42   : > { %407 = vmatpush.bf16.msra.mxu0 %v703_v24 }
  0x45   : > { %469 = vmatpush.bf16.msra.mxu1 %v694_v22 }
  0x46   : > { %408 = vmatpush.bf16.msra.mxu0 %v702_v25 }
  0x48   : > { %470 = vmatmul.bf16.vlgmr.msra.gmra.mxu1 %v319_v23 }
  0xa0   : > { %v296_v5 = vpop.xlane.xlu0 %295 }
  0xa1   : > { %v297_v6 = vmul.f32 0.03125, %v296_v5 }
  0xa3   : > { %v298_v7 = vsub.f32 %v290_v2, %v297_v6 }
  0xa5   : > { %v299_v8 = vsel %vm293_vm0, %v298_v7, 0.0 }
  0xa6   : > { %v300_v9 = vmul.f32 %v299_v8, %v299_v8 }
  0xa8   : > { %301 = vadd.xlane.f32.xlu0 %v300_v9 }
  0xc5   : > { %v471_v42 = vpop.f32.mrf.mxu1 }
  0xcd   : > { %v473_v43 = vpop.f32.mrf.mxu1 }
 0x11b   : > { %v302_v26 = vpop.xlane.xlu0 %301 }
 0x11c   : > { %v303_v27 = vmul.f32 0.032258064, %v302_v26 }
 0x11e   : > { %796 = vrsqrt.f32 %v303_v27  ;;  %vm311_vm1 = vcmp.eq.f32.partialorder %v303_v27, inf  ;;  %v314_v35 = vand.u32 2147483648, %v303_v27  ;;  %vm313_vm2 = vcmp.eq.f32.partialorder %v303_v27, 0.0 }
 0x124   : > { %v797_v28 = vpop.eup %796 }
 0x125   : > { %v305_v29 = vmul.f32 %v797_v28, %v303_v27 }
 0x127   : > { %v306_v30 = vmul.f32 %v797_v28, %v305_v29 }
 0x129   : > { %v307_v31 = vmul.f32 0.5, %v306_v30 }
 0x12b   : > { %v308_v32 = vsub.f32 1.5, %v307_v31 }
 0x12d   : > { %v309_v33 = vmul.f32 %v797_v28, %v308_v32 }
 0x12f   : > { %v310_v34 = vmul.f32 %v309_v33, %v303_v27 }
 0x131   : > { %v312_v36 = vsel %vm311_vm1, %v303_v27, %v310_v34 }
 0x132   : > { %v315_v37 = vsel %vm313_vm2, %v314_v35, %v312_v36 }
 0x133   : > { %v316_v38 = vadd.f32 1e-06, %v315_v37 }
 0x135   : > { %798 = vrcp.f32 %v316_v38 }
 0x13b   : > { %v799_v39 = vpop.eup %798 }
 0x13c   : > { %v318_v40 = vmul.f32 %v799_v39, %v299_v8 }
 0x13e   : > { %v336_v41 = vpack.c.bf16 %v318_v40, %v318_v40 }
 0x140   : > { %409 = vmatmul.bf16.vlgmr.msra.gmra.mxu0 %v336_v41 }
 0x1bd   : > { %v410_v45 = vpop.f32.mrf.mxu0 }
 0x1be   : > { %v472_v46 = vadd.f32 %v471_v42, %v410_v45 }
 0x1c0   : > { %v479_v47 = vadd.f32 %v795_v44, %v472_v46 }
 0x1c2   : > { %480 = vst [vmem:[%s286_s30] sm:$0xff] %v479_v47 }
 0x1c3   : > { %917 = shalt.err (!%p914_p13)
}
 0x1c4   : > { %720 = dma.vmem_to_hbm [thread:$0]  (%p1081_p0), %s496_s5, 128, %s498_s6, %s482_s18  }
 0x1c5   : > { %v412_v48 = vpop.f32.mrf.mxu0 }
 0x1c6 PF: > { %s509_s11 = sand.u32 1, %s956_s15   ;;  %p734_p2 = pnand %p618_p6, %p1088_p5 }
 0x1c7   : > { %s510_s26 = scalar_lea.sflag [#allocation4], %s509_s11 }
 0x1c8   : > { %p735_p4 = pneg %p734_p2 }
 0x1ca   : > { %951 = dma.done.wait (%p735_p4), %s510_s26, 128  }
 0x1cb   : > { %953 = vsyncadd (%p735_p4), %s510_s26, 4294967168  ;;  %s21_s20 = sadd.s32 1, %s976_s20   ;;  %s1168_s15 = smov %s960_s16 }
 0x1cc   : > { %p18_p7 = scmp.ge.s32.totalorder %s21_s20, 4   ;;  %s1169_s16 = smov %s964_s17 }
 0x1cd   : > { %s1170_s17 = smov %s1086_s24  ;;  %s1171_s18 = smov %s972_s19 }
 0x1ce   : > { %s1172_s19 = smov %s1174_s10  ;;  %20 = sbr.rel (!%p18_p7) target bundleno = 7 (0x7), region = 94 }
 0x1d3   :  { %516 = vsyncpa [#allocation3], 1 }
 0x1d4   :  { %518 = vsyncpa [#allocation3 + $0x1], 1 }
 0x1d5   :  { %519 = vsyncpa [#allocation6], 1 }
 0x1d6   :  { %520 = vsyncpa [#allocation4], 1 }
 0x1d7   :  { %522 = vsyncpa [#allocation4 + $0x1], 1 }

// kernel: tpu_custom_call.1
= control target key start
LH: loop header
LB: loop body
LE: loop exit
PB: predicated region body
PF: predicated region fallthrough
CT: control target
= control target key end

     0   :  { %9 = vsyncpa [#allocation3], 0  ;;  %s1158_s0 = inlined_call_operand.hbm [shape: f32[16,128], index: 0, kind: input, shape index: {}]   ;;  %s1159_s1 = inlined_call_operand.hbm [shape: bf16[128,128], index: 1, kind: input, shape index: {}]   ;;  %s1160_s2 = inlined_call_operand.hbm [shape: bf16[128,128], index: 2, kind: input, shape index: {}]   ;;  %s1161_s3 = inlined_call_operand.vmem [shape: f32[1,128], index: 3, kind: input, shape index: {}]   ;;  %s1162_s4 = inlined_call_operand.hbm [shape: f32[16,128], index: 4, kind: output, shape index: {}]  }
   0x1   :  { %11 = vsyncpa [#allocation3 + $0x1], 0 }
   0x2   :  { %12 = vsyncpa [#allocation6], 0 }
   0x3   :  { %13 = vsyncpa [#allocation4], 0 }
   0x4   :  { %15 = vsyncpa [#allocation4 + $0x1], 0  ;;  %s1007_s15 = smov 0   ;;  %s1009_s16 = smov 0  }
   0x5   :  { %s1011_s17 = smov 0   ;;  %s1013_s18 = smov 0  }
   0x6   :  { %s1015_s19 = smov 0   ;;  %s1017_s20 = smov 0  }
   0x7 LB: > { %s612_s21 = sadd.s32 4294967295, %s976_s20   ;;  %p614_p0 = scmp.ge.s32.totalorder %s976_s20, 1  ;;  %s976_s20 = sphi %s1017_s20, %s21_s20   ;;  %s972_s19 = sphi %s1015_s19, %s1172_s19   ;;  %s968_s18 = sphi %s1013_s18, %s1171_s18   ;;  %s964_s17 = sphi %s1011_s17, %s1170_s17   ;;  %s960_s16 = sphi %s1009_s16, %s1169_s16   ;;  %s956_s15 = sphi %s1007_s15, %s1168_s15  }
   0x8   : > { %p1041_p1 = scmp.eq.s32.totalorder %s612_s21, 0  ;;  %p170_p2 = scmp.lt.s32.totalorder %s976_s20, 3 }
   0x9   : > { %s183_s25 = sshll.u32 %s1159_s1, 4  ;;  %s978_s27 = smov [#allocation5]   ;;  %s184_s25 = int_to_ptr.hbm [resolvable:$true] %s183_s25 }
   0xa   : > { %p1049_p3 = pnand %p614_p0, %p170_p2  ;;  %s185_s28 = sshll.u32 %s978_s27, 4  ;;  %s186_s28 = int_to_ptr.vmem [resolvable:$true] %s185_s28 }
   0xb   : > { %p618_p6 = scmp.ge.s32.totalorder %s976_s20, 2  ;;  %s199_s5 = sshll.u32 %s1160_s2, 4  ;;  %s200_s5 = int_to_ptr.hbm [resolvable:$true] %s199_s5 }
   0xc   : > { %p722_p4 = pneg %p1049_p3  ;;  %s979_s6 = smov 64  }
   0xd   : > { %s980_s7 = smov 4   ;;  %s981_s8 = smov [#allocation7]  }
   0xe   : > { %p723_p5 = pnand %p722_p4, %p1041_p1  ;;  %s201_s9 = sshll.u32 %s981_s8, 4  ;;  %s202_s9 = int_to_ptr.vmem [resolvable:$true] %s201_s9 }
   0xf   : > { %s33_s10 = sadd.s32 1, %s972_s19  ;;  %s613_s11 = sadd.s32 4294967294, %s976_s20  }
  0x10   : > { %725 = dma.hbm_to_vmem [thread:$0]  (!%p723_p5), %s184_s25, 1024, %s186_s28, [#allocation6], %s979_s6, %s979_s6, %s980_s7  }
  0x11   : > { %728 = dma.hbm_to_vmem [thread:$0]  (!%p723_p5), %s200_s5, 1024, %s202_s9, [#allocation6], %s979_s6, %s979_s6, %s980_s7  }
  0x12   : > { %p35_p7 = scmp.ge.s32.totalorder %s33_s10, 2  ;;  %s40_s12 = sadd.s32 1, %s964_s17 }
  0x13   : > { %p47_p8 = scmp.ne.s32.totalorder %s964_s17, %s960_s16  ;;  %p48_p9 = scmp.eq.s32.totalorder %s976_s20, 0 }
  0x14   : > { %s1174_s10 = smov (%p35_p7, %s33_s10), 0  ;;  %p53_p10 = scmp.ne.s32.totalorder %s960_s16, %s956_s15 }
  0x15   : > { %s37_s13 = ssub.s32 %s972_s19, %s1174_s10  ;;  %p157_p11 = scmp.eq.s32.totalorder %s612_s21, 1 }
  0x16   : > { %p38_p12 = scmp.eq.s32.totalorder %s37_s13, 0  ;;  %p1077_p13 = por %p1041_p1, %p53_p10 }
  0x17   : > { %p1081_p0 = por %p157_p11, %p47_p8  ;;  %p163_p2 = scmp.eq.s32.totalorder %s613_s11, 1 }
  0x18   : > { %s1086_s24 = scalar_select %p38_p12, %s964_s17, %s40_s12  }
  0x19   : > { %p49_p4 = por %p48_p9, %p47_p8  ;;  %p1088_p5 = por %p163_p2, %p53_p10 }
  0x1a   : > { %s221_s27 = sand.u32 1, %s964_s17   ;;  %s620_s21 = sshll.u32 %s972_s19, 3 }
  0x1b   : > { %p739_p7 = scmp.lt.s32.totalorder %s976_s20, 2  ;;  %s619_s28 = sshll.u32 %s221_s27, 3 }
  0x1c   : > { %s229_s5 = scalar_lea.hbm %s1158_s0, %s620_s21  ;;  %s225_s7 = scalar_lea.vmem [#allocation2], %s619_s28 }
  0x1d   : > { %s231_s6 = sshll.u32 %s229_s5, 4  ;;  %s233_s8 = sshll.u32 %s225_s7, 4  ;;  %s232_s6 = int_to_ptr.hbm [resolvable:$true] %s231_s6  ;;  %s234_s8 = int_to_ptr.vmem [resolvable:$true] %s233_s8 }
  0x1e   : > { %p730_p11 = pnand %p739_p7, %p49_p4  ;;  %s222_s9 = scalar_lea.sflag [#allocation3], %s221_s27 }
  0x1f   : > { %242 = sbr.rel (%p1049_p3) target bundleno = 454 (0x1c6), region = 36  ;;  %s1101_s11 = sand.u32 (!%p1049_p3), 1, %s960_s16  }
  0x20   : > { %732 = dma.hbm_to_vmem [thread:$0]  (!%p730_p11), %s232_s6, 128, %s234_s8, %s222_s9  }
  0x21   : > { %s622_s12 = sshll.u32 (!%p1049_p3), %s1101_s11, 3  ;;  %s245_s13 = scalar_lea.sflag (!%p1049_p3), [#allocation3], %s1101_s11 }
  0x22   : > { %s248_s21 = scalar_lea.vmem (!%p1049_p3), [#allocation2], %s622_s12 }
  0x24   : > { %943 = dma.done.wait (%p1077_p13), %s245_s13, 128  }
  0x25   : > { %945 = vsyncadd (%p1077_p13), %s245_s13, 4294967168 }
  0x26   : > { %947 = dma.done.wait (%p1041_p1), [#allocation6], 2048  }
  0x27   : > { %949 = vsyncadd (%p1041_p1), [#allocation6], 4294965248  ;;  %v291_v0 = vlaneseq  ;;  %v290_v2 = vld [vmem:[%s248_s21] sm:$0xff]  ;;  %v699_v12 = vld [vmem:[#allocation5 + $0x28] sm:$0xff]  ;;  %s691_s22 = sshll.u32 %s968_s18, 3  ;;  %s286_s30 = scalar_lea.vmem [#allocation8], %s622_s12 }
  0x28   : > { %v701_v4 = vld [vmem:[#allocation5 + $0x38] sm:$0xff]  ;;  %v700_v10 = vld [vmem:[#allocation5 + $0x30] sm:$0xff]  ;;  %v698_v14 = vld [vmem:[#allocation5 + $0x20] sm:$0xff]  ;;  %v319_v23 = vpack.c.bf16 %v290_v2, %v290_v2  ;;  %s493_s27 = scalar_lea.hbm %s1162_s4, %s691_s22  ;;  %s495_s5 = sshll.u32 %s286_s30, 4  ;;  %s496_s5 = int_to_ptr.vmem [resolvable:$true] %s495_s5 }
  0x29   : > { %v292_v1 = vand.u32 127, %v291_v0  ;;  %462 = vmatpush.bf16.msra.mxu1 %v701_v4  ;;  %v709_v11 = vld [vmem:[#allocation7 + $0x38] sm:$0xff]  ;;  %v708_v13 = vld [vmem:[#allocation7 + $0x30] sm:$0xff]  ;;  %v707_v15 = vld [vmem:[#allocation7 + $0x28] sm:$0xff]  ;;  %s497_s6 = sshll.u32 %s493_s27, 4  ;;  %s482_s18 = scalar_lea.sflag [#allocation4], %s1101_s11  ;;  %s498_s6 = int_to_ptr.hbm [resolvable:$true] %s497_s6 }
  0x2a   : > { %401 = vmatpush.bf16.msra.mxu0 %v709_v11  ;;  %v697_v16 = vld [vmem:[#allocation5 + $0x18] sm:$0xff]  ;;  %v706_v17 = vld [vmem:[#allocation7 + $0x20] sm:$0xff]  ;;  %v696_v18 = vld [vmem:[#allocation5 + $0x10] sm:$0xff]  ;;  %s904_s7 = sshra.s32 %s498_s6, 4  ;;  %s910_s21 = scalar_lea.hbm %s1162_s4, 16  ;;  %s905_s7 = int_to_ptr.hbm [resolvable:$true] %s904_s7 }
  0x2b   : > { %vm293_vm0 = vcmp.lt.s32.totalorder %v292_v1, 32  ;;  %v705_v19 = vld [vmem:[#allocation7 + $0x18] sm:$0xff]  ;;  %v695_v20 = vld [vmem:[#allocation5 + $0x8] sm:$0xff]  ;;  %v704_v21 = vld [vmem:[#allocation7 + $0x10] sm:$0xff]  ;;  %s906_s8 = scalar_lea.hbm %s905_s7, 8  ;;  %p911_p9 = scmp.lt.s32.totalorder %s905_s7, %s1162_s4 }
  0x2c   : > { %v294_v3 = vsel %vm293_vm0, %v290_v2, 0.0  ;;  %v694_v22 = vld [vmem:[#allocation5] sm:$0xff]  ;;  %v703_v24 = vld [vmem:[#allocation7 + $0x8] sm:$0xff]  ;;  %v795_v44 = vld [vmem:[%s1161_s3] ss:$0 sm:$0xff]  ;;  %p907_p1 = scmp.ne.s32.totalorder %s905_s7, %s906_s8  ;;  %p912_p10 = scmp.lt.s32.totalorder %s910_s21, %s906_s8 }
  0x2d   : > { %295 = vadd.xlane.f32.xlu0 %v294_v3  ;;  %463 = vmatpush.bf16.msra.mxu1 %v700_v10  ;;  %v702_v25 = vld [vmem:[#allocation7] sm:$0xff] }
  0x2e   : > { %402 = vmatpush.bf16.msra.mxu0 %v708_v13  ;;  %p908_p3 = pnand %p907_p1, %p1081_p0  ;;  %p913_p12 = por %p912_p10, %p911_p9 }
  0x30   : > { %p909_p8 = pneg %p908_p3 }
  0x31   : > { %464 = vmatpush.bf16.msra.mxu1 %v699_v12 }
  0x32   : > { %403 = vmatpush.bf16.msra.mxu0 %v707_v15  ;;  %p914_p13 = pnand %p913_p12, %p909_p8 }
  0x35   : > { %465 = vmatpush.bf16.msra.mxu1 %v698_v14 }
  0x36   : > { %404 = vmatpush.bf16.msra.mxu0 %v706_v17 }
  0x39   : > { %466 = vmatpush.bf16.msra.mxu1 %v697_v16 }
  0x3a   : > { %405 = vmatpush.bf16.msra.mxu0 %v705_v19 }
  0x3d   : > { %467 = vmatpush.bf16.msra.mxu1 %v696_v18 }
  0x3e   : > { %406 = vmatpush.bf16.msra.mxu0 %v704_v21 }
  0x41   : > { %468 = vmatpush.bf16.msra.mxu1 %v695_v20 }
  0x42   : > { %407 = vmatpush.bf16.msra.mxu0 %v703_v24 }
  0x45   : > { %469 = vmatpush.bf16.msra.mxu1 %v694_v22 }
  0x46   : > { %408 = vmatpush.bf16.msra.mxu0 %v702_v25 }
  0x48   : > { %470 = vmatmul.bf16.vlgmr.msra.gmra.mxu1 %v319_v23 }
  0xa0   : > { %v296_v5 = vpop.xlane.xlu0 %295 }
  0xa1   : > { %v297_v6 = vmul.f32 0.03125, %v296_v5 }
  0xa3   : > { %v298_v7 = vsub.f32 %v290_v2, %v297_v6 }
  0xa5   : > { %v299_v8 = vsel %vm293_vm0, %v298_v7, 0.0 }
  0xa6   : > { %v300_v9 = vmul.f32 %v299_v8, %v299_v8 }
  0xa8   : > { %301 = vadd.xlane.f32.xlu0 %v300_v9 }
  0xc5   : > { %v471_v42 = vpop.f32.mrf.mxu1 }
  0xcd   : > { %v473_v43 = vpop.f32.mrf.mxu1 }
 0x11b   : > { %v302_v26 = vpop.xlane.xlu0 %301 }
 0x11c   : > { %v303_v27 = vmul.f32 0.032258064, %v302_v26 }
 0x11e   : > { %796 = vrsqrt.f32 %v303_v27  ;;  %vm311_vm1 = vcmp.eq.f32.partialorder %v303_v27, inf  ;;  %v314_v35 = vand.u32 2147483648, %v303_v27  ;;  %vm313_vm2 = vcmp.eq.f32.partialorder %v303_v27, 0.0 }
 0x124   : > { %v797_v28 = vpop.eup %796 }
 0x125   : > { %v305_v29 = vmul.f32 %v797_v28, %v303_v27 }
 0x127   : > { %v306_v30 = vmul.f32 %v797_v28, %v305_v29 }
 0x129   : > { %v307_v31 = vmul.f32 0.5, %v306_v30 }
 0x12b   : > { %v308_v32 = vsub.f32 1.5, %v307_v31 }
 0x12d   : > { %v309_v33 = vmul.f32 %v797_v28, %v308_v32 }
 0x12f   : > { %v310_v34 = vmul.f32 %v309_v33, %v303_v27 }
 0x131   : > { %v312_v36 = vsel %vm311_vm1, %v303_v27, %v310_v34 }
 0x132   : > { %v315_v37 = vsel %vm313_vm2, %v314_v35, %v312_v36 }
 0x133   : > { %v316_v38 = vadd.f32 1e-06, %v315_v37 }
 0x135   : > { %798 = vrcp.f32 %v316_v38 }
 0x13b   : > { %v799_v39 = vpop.eup %798 }
 0x13c   : > { %v318_v40 = vmul.f32 %v799_v39, %v299_v8 }
 0x13e   : > { %v336_v41 = vpack.c.bf16 %v318_v40, %v318_v40 }
 0x140   : > { %409 = vmatmul.bf16.vlgmr.msra.gmra.mxu0 %v336_v41 }
 0x1bd   : > { %v410_v45 = vpop.f32.mrf.mxu0 }
 0x1be   : > { %v472_v46 = vadd.f32 %v471_v42, %v410_v45 }
 0x1c0   : > { %v479_v47 = vadd.f32 %v795_v44, %v472_v46 }
 0x1c2   : > { %480 = vst [vmem:[%s286_s30] sm:$0xff] %v479_v47 }
 0x1c3   : > { %917 = shalt.err (!%p914_p13)
}
 0x1c4   : > { %720 = dma.vmem_to_hbm [thread:$0]  (%p1081_p0), %s496_s5, 128, %s498_s6, %s482_s18  }
 0x1c5   : > { %v412_v48 = vpop.f32.mrf.mxu0 }
 0x1c6 PF: > { %s509_s11 = sand.u32 1, %s956_s15   ;;  %p734_p2 = pnand %p618_p6, %p1088_p5 }
 0x1c7   : > { %s510_s26 = scalar_lea.sflag [#allocation4], %s509_s11 }
 0x1c8   : > { %p735_p4 = pneg %p734_p2 }
 0x1ca   : > { %951 = dma.done.wait (%p735_p4), %s510_s26, 128  }
 0x1cb   : > { %953 = vsyncadd (%p735_p4), %s510_s26, 4294967168  ;;  %s21_s20 = sadd.s32 1, %s976_s20   ;;  %s1168_s15 = smov %s960_s16 }
 0x1cc   : > { %p18_p7 = scmp.ge.s32.totalorder %s21_s20, 4   ;;  %s1169_s16 = smov %s964_s17 }
 0x1cd   : > { %s1170_s17 = smov %s1086_s24  ;;  %s1171_s18 = smov %s972_s19 }
 0x1ce   : > { %s1172_s19 = smov %s1174_s10  ;;  %20 = sbr.rel (!%p18_p7) target bundleno = 7 (0x7), region = 94 }
 0x1d3   :  { %516 = vsyncpa [#allocation3], 1 }
 0x1d4   :  { %518 = vsyncpa [#allocation3 + $0x1], 1 }
 0x1d5   :  { %519 = vsyncpa [#allocation6], 1 }
 0x1d6   :  { %520 = vsyncpa [#allocation4], 1 }
 0x1d7   :  { %522 = vsyncpa [#allocation4 + $0x1], 1 }

</bundles_post_ra>
